<compile_context>
chip_gen: v5e
topology: v5e:2x2
jax: 0.10.0
libtpu: 0.0.40
codegen_flags: <defaults>
</compile_context>

<pallas_src>
import functools

import jax
import jax.numpy as jnp
from jax import lax
from jax.experimental import pallas as pl
from jax.experimental.pallas import tpu as pltpu

LN_EPS = 1e-5
_INV_SQRT2 = 0.7071067811865476
_SQRT_2_OVER_PI = 0.7978845608028654


def _round_up(x, m):
    return (x + m - 1) // m * m


def _chip_vmem_bytes():
    """Physical VMEM of the local TPU; conservative fallback if unqueryable."""
    try:
        return int(pltpu.get_tpu_info().vmem_capacity_bytes)
    except Exception:
        return 64 * 1024 * 1024  # v7x per-TC size = safe lower bound


def _layernorm(h, gamma, beta, inv_f):
    # Two-pass (mean, then centered second moment): matches nn.LayerNorm and
    # avoids the E[h^2]-mu^2 cancellation issue in f32.
    mu = jnp.sum(h, axis=-1, keepdims=True) * inv_f
    d = h - mu
    var = jnp.sum(d * d, axis=-1, keepdims=True) * inv_f
    return d * lax.rsqrt(var + LN_EPS) * gamma + beta


def _gelu(h, approx):
    if approx:
        # tanh formulation runs on the EUP slot -> VALU relief (v5e especially).
        return 0.5 * h * (1.0 + jnp.tanh(_SQRT_2_OVER_PI * (h + 0.044715 * h * h * h)))
    # PyTorch nn.GELU() default = exact erf formulation.
    return 0.5 * h * (1.0 + lax.erf(h * _INV_SQRT2))


def residual_block_kernel(x_ref, w1_ref, w2_ref, p_ref, o_ref, *, inv_f, approx_gelu):
    mxu_dt = w1_ref.dtype  # weights' dtype drives MXU operand dtype (bf16 default)

    # Packed grid-invariant vectors: rows 0..5 = b1, g1, be1, b2, g2, be2.
    b1, g1, be1 = p_ref[0:1, :], p_ref[1:2, :], p_ref[2:3, :]
    b2, g2, be2 = p_ref[3:4, :], p_ref[4:5, :], p_ref[5:6, :]

    # Linear 1 (x @ W1 + b1); W1 pre-transposed to (in, out) in the wrapper.
    h = jnp.dot(x_ref[...].astype(mxu_dt), w1_ref[...],
                preferred_element_type=jnp.float32) + b1
    # LayerNorm 1
    h = _layernorm(h, g1, be1, inv_f)
    # GELU
    h = _gelu(h, approx_gelu)
    # Linear 2
    h = jnp.dot(h.astype(mxu_dt), w2_ref[...],
                preferred_element_type=jnp.float32) + b2
    # LayerNorm 2
    h = _layernorm(h, g2, be2, inv_f)

    # Residual add: re-read x from VMEM here (keeps x's live range short and
    # avoids spilling a (tm,F) f32 tile across the whole kernel).
    o_ref[...] = (x_ref[...].astype(jnp.float32) + h).astype(o_ref.dtype)


def _choose_tm(B, F, tm, w_itemsize, vmem_cap):
    """Clamp the row tile to the batch and to the chip's VMEM budget."""
    tm = min(tm, _round_up(B, 8))
    # Resident bytes independent of tm: both weights + packed vectors.
    weight_bytes = 2 * F * F * w_itemsize + 8 * F * 4
    # Per-row bytes: x/out double-buffered (4 slabs) + ~3 live f32 intermediates.
    per_row = 7 * F * 4
    budget = int(0.6 * vmem_cap) - weight_bytes
    if budget > 0:
        tm_cap = max(8, (budget // per_row) // 8 * 8)
        tm = min(tm, tm_cap)
    if tm >= 256:
        tm = (tm // 256) * 256  # fill the 256-wide MXU cleanly (v6e/v7x)
    return max(tm, 8)


def residual_block(x, params, *, tm=512, mxu_dtype=jnp.bfloat16, gelu_approx=False):
    """x: (B, F) float32. params: dict of w1,b1,g1,be1,w2,b2,g2,be2.

    tm:        row tile (sweep 256-1024 on v6e, smaller on v7x; clamped here).
    mxu_dtype: matmul-operand dtype (bf16 default; accumulation stays f32).
    """
    B, F = x.shape
    w1 = params["w1"].astype(mxu_dtype)
    w2 = params["w2"].astype(mxu_dtype)
    # Pack the six (1,F) vectors into one (8,F) f32 operand (rows 6,7 = pad).
    ln_pack = jnp.concatenate(
        [params["b1"], params["g1"], params["be1"],
         params["b2"], params["g2"], params["be2"],
         jnp.zeros((2, F), jnp.float32)], axis=0)

    itemsize_w = jnp.dtype(w1.dtype).itemsize
    vmem_cap = _chip_vmem_bytes()
    tm = _choose_tm(B, F, tm, itemsize_w, vmem_cap)
    grid = (pl.cdiv(B, tm),)

    # TODO(synk): for F large enough that 2*F*F weights no longer fit VMEM
    # (~>2800 f32 / ~>4000 bf16 on v7x), stream W1/W2 column blocks with
    # pltpu.emit_pipeline and run each LayerNorm under pl.when on the last block.

    # Grid-invariant operands: constant index_map, single-buffered (halves
    # their VMEM reservation).
    full_fxf = pl.BlockSpec((F, F), lambda i: (0, 0), pipeline_mode=pl.Buffered(1))
    pack_spec = pl.BlockSpec((8, F), lambda i: (0, 0), pipeline_mode=pl.Buffered(1))

    # Chip-aware VMEM budget: never exceed physical VMEM (v7x = 64 MiB/TC).
    vmem_need = (2 * F * F * itemsize_w      # w1, w2 (single-buffered)
                 + 8 * F * 4                 # packed bias/LN vectors
                 + 2 * 2 * tm * F * 4        # x, out (double-buffered)
                 + 3 * tm * F * 4)           # live intermediates / spill headroom
    vmem_limit = int(min(max(int(1.25 * vmem_need), 32 * 1024 * 1024),
                         int(0.9 * vmem_cap)))

    cost = pl.CostEstimate(
        flops=int(4 * B * F * F + 20 * B * F),        # two GEMMs + elementwise chain
        transcendentals=int(B * F + 2 * B),           # erf/tanh per elem, rsqrt per row
        bytes_accessed=int(2 * B * F * 4 + 2 * F * F * itemsize_w + 8 * F * 4),
    )

    kernel = functools.partial(residual_block_kernel,
                               inv_f=float(1.0 / F), approx_gelu=bool(gelu_approx))

    return pl.pallas_call(
        kernel,
        out_shape=jax.ShapeDtypeStruct((B, F), x.dtype),
        grid_spec=pltpu.PrefetchScalarGridSpec(
            num_scalar_prefetch=0,
            grid=grid,
            in_specs=[
                pl.BlockSpec((tm, F), lambda i: (i, 0)),  # x rows
                full_fxf,                                  # w1
                full_fxf,                                  # w2
                pack_spec,                                 # packed b/gamma/beta
            ],
            out_specs=pl.BlockSpec((tm, F), lambda i: (i, 0)),
        ),
        compiler_params=pltpu.CompilerParams(
            dimension_semantics=("parallel",),
            vmem_limit_bytes=vmem_limit,
        ),
        cost_estimate=cost,
    )(x, w1, w2, ln_pack)


def init_params(key, in_features):
    """Deterministic init mimicking PyTorch defaults (Linear: U(-k,k), LN: 1/0)."""
    k1, k2, k3, k4 = jax.random.split(key, 4)
    bound = 1.0 / jnp.sqrt(in_features)
    # PyTorch Linear weight is (out, in); y = x @ W.T + b. Pre-transpose to (in, out).
    w1_pt = jax.random.uniform(k1, (in_features, in_features), jnp.float32, -bound, bound)
    w2_pt = jax.random.uniform(k3, (in_features, in_features), jnp.float32, -bound, bound)
    b1 = jax.random.uniform(k2, (1, in_features), jnp.float32, -bound, bound)
    b2 = jax.random.uniform(k4, (1, in_features), jnp.float32, -bound, bound)
    return {
        "w1": w1_pt.T, "b1": b1,
        "g1": jnp.ones((1, in_features), jnp.float32),
        "be1": jnp.zeros((1, in_features), jnp.float32),
        "w2": w2_pt.T, "b2": b2,
        "g2": jnp.ones((1, in_features), jnp.float32),
        "be2": jnp.zeros((1, in_features), jnp.float32),
    }


def residual_block_ref(x, p):
    """Pure-JAX f32 reference for verification."""
    F = x.shape[-1]
    inv_f = 1.0 / F
    h = x @ p["w1"] + p["b1"]
    h = _layernorm(h, p["g1"], p["be1"], inv_f)
    h = _gelu(h, approx=False)
    h = h @ p["w2"] + p["b2"]
    h = _layernorm(h, p["g2"], p["be2"], inv_f)
    return x + h


if __name__ == "__main__":
    key = jax.random.PRNGKey(0)
    kx, kp = jax.random.split(key)

    B, F = 32, 128  # small demo: batch=32, in_features=128 (single grid step)
    x = jax.random.normal(kx, (B, F), jnp.float32)
    params = init_params(kp, F)
    ref = residual_block_ref(x, params)

    # 1) f32 MXU operands: tight parity with the f32 reference.
    out_f32 = jax.block_until_ready(residual_block(x, params, mxu_dtype=jnp.float32))
    assert out_f32.shape == (B, F) and out_f32.dtype == jnp.float32
    assert jnp.max(jnp.abs(out_f32 - ref)) < 1e-4, "f32 kernel mismatch vs reference"

    # 2) Default bf16 MXU operands (f32 accumulation): looser tolerance.
    out_bf16 = jax.block_until_ready(residual_block(x, params))
    assert out_bf16.shape == (B, F) and out_bf16.dtype == jnp.float32
    assert jnp.max(jnp.abs(out_bf16 - ref)) < 8e-2, "bf16 kernel mismatch vs reference"

    print("KERNEL_OK")
</pallas_src>

<mosaic_0001>
module attributes {stable_mosaic.version = 11 : i64} {
  func.func @residual_block_kernel(%arg0: i32, %arg1: memref<32x128xf32, #tpu.memory_space<vmem>>, %arg2: memref<128x128xf32, #tpu.memory_space<vmem>>, %arg3: memref<128x128xf32, #tpu.memory_space<vmem>>, %arg4: memref<8x128xf32, #tpu.memory_space<vmem>>, %arg5: memref<32x128xf32, #tpu.memory_space<vmem>>) attributes {dimension_semantics = [#tpu.dimension_semantics<parallel>], iteration_bounds = array<i64: 1>, scalar_prefetch = 0 : i64, scratch_operands = 0 : i64, tpu.core_type = #tpu.core_type<tc>, window_params = [{transform_indices = @transform_0, window_bounds = array<i64: 32, 128>}, {pipeline_mode = #tpu.pipeline_mode<synchronous>, transform_indices = @transform_1, window_bounds = array<i64: 128, 128>}, {pipeline_mode = #tpu.pipeline_mode<synchronous>, transform_indices = @transform_2, window_bounds = array<i64: 128, 128>}, {pipeline_mode = #tpu.pipeline_mode<synchronous>, transform_indices = @transform_3, window_bounds = array<i64: 8, 128>}, {transform_indices = @transform_4, window_bounds = array<i64: 32, 128>}]} {
    %c0 = arith.constant 0 : index
    %c0_0 = arith.constant 0 : index
    %0 = vector.load %arg4[%c0, %c0_0] : memref<8x128xf32, #tpu.memory_space<vmem>>, vector<1x128xf32>
    %c1 = arith.constant 1 : index
    %c0_1 = arith.constant 0 : index
    %1 = vector.load %arg4[%c1, %c0_1] : memref<8x128xf32, #tpu.memory_space<vmem>>, vector<1x128xf32>
    %c2 = arith.constant 2 : index
    %c0_2 = arith.constant 0 : index
    %2 = vector.load %arg4[%c2, %c0_2] : memref<8x128xf32, #tpu.memory_space<vmem>>, vector<1x128xf32>
    %c3 = arith.constant 3 : index
    %c0_3 = arith.constant 0 : index
    %3 = vector.load %arg4[%c3, %c0_3] : memref<8x128xf32, #tpu.memory_space<vmem>>, vector<1x128xf32>
    %c4 = arith.constant 4 : index
    %c0_4 = arith.constant 0 : index
    %4 = vector.load %arg4[%c4, %c0_4] : memref<8x128xf32, #tpu.memory_space<vmem>>, vector<1x128xf32>
    %c5 = arith.constant 5 : index
    %c0_5 = arith.constant 0 : index
    %5 = vector.load %arg4[%c5, %c0_5] : memref<8x128xf32, #tpu.memory_space<vmem>>, vector<1x128xf32>
    %c0_6 = arith.constant 0 : index
    %c0_7 = arith.constant 0 : index
    %6 = vector.load %arg1[%c0_6, %c0_7] : memref<32x128xf32, #tpu.memory_space<vmem>>, vector<32x128xf32>
    %c0_8 = arith.constant 0 : index
    %c0_9 = arith.constant 0 : index
    %7 = vector.load %arg2[%c0_8, %c0_9] : memref<128x128xf32, #tpu.memory_space<vmem>>, vector<128x128xf32>
    %cst = arith.constant dense<0.000000e+00> : vector<32x128xf32>
    %8 = tpu.matmul %6, %7, %cst {dimension_numbers = #tpu.dot_dimension_numbers<[1], [0], [0], [1], [0, 0, 1, 1], [], []>} : vector<32x128xf32>, vector<128x128xf32>, vector<32x128xf32> -> vector<32x128xf32>
    %9 = vector.broadcast %0 : vector<1x128xf32> to vector<32x128xf32>
    %10 = arith.addf %8, %9 : vector<32x128xf32>
    %cst_10 = arith.constant dense<0.000000e+00> : vector<32xf32>
    %11 = vector.multi_reduction <add>, %10, %cst_10 [1] : vector<32x128xf32> to vector<32xf32>
    %12 = vector.shape_cast %11 : vector<32xf32> to vector<32x1xf32>
    %cst_11 = arith.constant 7.812500e-03 : f32
    %13 = vector.broadcast %cst_11 : f32 to vector<32x1xf32>
    %14 = arith.mulf %12, %13 : vector<32x1xf32>
    %15 = vector.broadcast %14 : vector<32x1xf32> to vector<32x128xf32>
    %16 = arith.subf %10, %15 : vector<32x128xf32>
    %17 = arith.mulf %16, %16 : vector<32x128xf32>
    %cst_12 = arith.constant dense<0.000000e+00> : vector<32xf32>
    %18 = vector.multi_reduction <add>, %17, %cst_12 [1] : vector<32x128xf32> to vector<32xf32>
    %19 = vector.shape_cast %18 : vector<32xf32> to vector<32x1xf32>
    %cst_13 = arith.constant 7.812500e-03 : f32
    %20 = vector.broadcast %cst_13 : f32 to vector<32x1xf32>
    %21 = arith.mulf %19, %20 : vector<32x1xf32>
    %cst_14 = arith.constant 9.99999974E-6 : f32
    %22 = vector.broadcast %cst_14 : f32 to vector<32x1xf32>
    %23 = arith.addf %21, %22 : vector<32x1xf32>
    %24 = math.rsqrt %23 : vector<32x1xf32>
    %25 = vector.broadcast %24 : vector<32x1xf32> to vector<32x128xf32>
    %26 = arith.mulf %16, %25 : vector<32x128xf32>
    %27 = vector.broadcast %1 : vector<1x128xf32> to vector<32x128xf32>
    %28 = arith.mulf %26, %27 : vector<32x128xf32>
    %29 = vector.broadcast %2 : vector<1x128xf32> to vector<32x128xf32>
    %30 = arith.addf %28, %29 : vector<32x128xf32>
    %cst_15 = arith.constant 5.000000e-01 : f32
    %31 = vector.broadcast %cst_15 : f32 to vector<32x128xf32>
    %32 = arith.mulf %31, %30 : vector<32x128xf32>
    %cst_16 = arith.constant 0.707106769 : f32
    %33 = vector.broadcast %cst_16 : f32 to vector<32x128xf32>
    %34 = arith.mulf %30, %33 : vector<32x128xf32>
    %35 = math.erf %34 : vector<32x128xf32>
    %cst_17 = arith.constant 1.000000e+00 : f32
    %36 = vector.broadcast %cst_17 : f32 to vector<32x128xf32>
    %37 = arith.addf %36, %35 : vector<32x128xf32>
    %38 = arith.mulf %32, %37 : vector<32x128xf32>
    %c0_18 = arith.constant 0 : index
    %c0_19 = arith.constant 0 : index
    %39 = vector.load %arg3[%c0_18, %c0_19] : memref<128x128xf32, #tpu.memory_space<vmem>>, vector<128x128xf32>
    %cst_20 = arith.constant dense<0.000000e+00> : vector<32x128xf32>
    %40 = tpu.matmul %38, %39, %cst_20 {dimension_numbers = #tpu.dot_dimension_numbers<[1], [0], [0], [1], [0, 0, 1, 1], [], []>} : vector<32x128xf32>, vector<128x128xf32>, vector<32x128xf32> -> vector<32x128xf32>
    %41 = vector.broadcast %3 : vector<1x128xf32> to vector<32x128xf32>
    %42 = arith.addf %40, %41 : vector<32x128xf32>
    %cst_21 = arith.constant dense<0.000000e+00> : vector<32xf32>
    %43 = vector.multi_reduction <add>, %42, %cst_21 [1] : vector<32x128xf32> to vector<32xf32>
    %44 = vector.shape_cast %43 : vector<32xf32> to vector<32x1xf32>
    %cst_22 = arith.constant 7.812500e-03 : f32
    %45 = vector.broadcast %cst_22 : f32 to vector<32x1xf32>
    %46 = arith.mulf %44, %45 : vector<32x1xf32>
    %47 = vector.broadcast %46 : vector<32x1xf32> to vector<32x128xf32>
    %48 = arith.subf %42, %47 : vector<32x128xf32>
    %49 = arith.mulf %48, %48 : vector<32x128xf32>
    %cst_23 = arith.constant dense<0.000000e+00> : vector<32xf32>
    %50 = vector.multi_reduction <add>, %49, %cst_23 [1] : vector<32x128xf32> to vector<32xf32>
    %51 = vector.shape_cast %50 : vector<32xf32> to vector<32x1xf32>
    %cst_24 = arith.constant 7.812500e-03 : f32
    %52 = vector.broadcast %cst_24 : f32 to vector<32x1xf32>
    %53 = arith.mulf %51, %52 : vector<32x1xf32>
    %cst_25 = arith.constant 9.99999974E-6 : f32
    %54 = vector.broadcast %cst_25 : f32 to vector<32x1xf32>
    %55 = arith.addf %53, %54 : vector<32x1xf32>
    %56 = math.rsqrt %55 : vector<32x1xf32>
    %57 = vector.broadcast %56 : vector<32x1xf32> to vector<32x128xf32>
    %58 = arith.mulf %48, %57 : vector<32x128xf32>
    %59 = vector.broadcast %4 : vector<1x128xf32> to vector<32x128xf32>
    %60 = arith.mulf %58, %59 : vector<32x128xf32>
    %61 = vector.broadcast %5 : vector<1x128xf32> to vector<32x128xf32>
    %62 = arith.addf %60, %61 : vector<32x128xf32>
    %c0_26 = arith.constant 0 : index
    %c0_27 = arith.constant 0 : index
    %63 = vector.load %arg1[%c0_26, %c0_27] : memref<32x128xf32, #tpu.memory_space<vmem>>, vector<32x128xf32>
    %64 = arith.addf %63, %62 : vector<32x128xf32>
    %c0_28 = arith.constant 0 : index
    %c0_29 = arith.constant 0 : index
    %65 = vector.load %arg5[%c0_28, %c0_29] : memref<32x128xf32, #tpu.memory_space<vmem>>, vector<32x128xf32>
    tpu.vector_store %arg5[%c0_28, %c0_29], %64 {strides = array<i32>} : memref<32x128xf32, #tpu.memory_space<vmem>>, vector<32x128xf32>,
    return
  }
  func.func @transform_0(%arg0: i32) -> (i32, i32) {
    %c0_i32 = arith.constant 0 : i32
    %c0_i32_0 = arith.constant 0 : i32
    return %arg0, %c0_i32 : i32, i32
  }
  func.func @transform_1(%arg0: i32) -> (i32, i32) {
    %c0_i32 = arith.constant 0 : i32
    %c0_i32_0 = arith.constant 0 : i32
    %c0_i32_1 = arith.constant 0 : i32
    return %c0_i32, %c0_i32_0 : i32, i32
  }
  func.func @transform_2(%arg0: i32) -> (i32, i32) {
    %c0_i32 = arith.constant 0 : i32
    %c0_i32_0 = arith.constant 0 : i32
    %c0_i32_1 = arith.constant 0 : i32
    return %c0_i32, %c0_i32_0 : i32, i32
  }
  func.func @transform_3(%arg0: i32) -> (i32, i32) {
    %c0_i32 = arith.constant 0 : i32
    %c0_i32_0 = arith.constant 0 : i32
    %c0_i32_1 = arith.constant 0 : i32
    return %c0_i32, %c0_i32_0 : i32, i32
  }
  func.func @transform_4(%arg0: i32) -> (i32, i32) {
    %c0_i32 = arith.constant 0 : i32
    %c0_i32_0 = arith.constant 0 : i32
    return %arg0, %c0_i32 : i32, i32
  }
}

</mosaic_0001>

<bundles_post_ra>
// kernel: tpu_custom_call.1
= control target key start
LH: loop header
LB: loop body
LE: loop exit
PB: predicated region body
PF: predicated region fallthrough
CT: control target
= control target key end

     0   :  { %9 = vsyncpa [#allocation3], 0  ;;  %s998_s0 = inlined_call_operand.hbm [shape: f32[32,128], index: 0, kind: input, shape index: {}]   ;;  %s999_s1 = inlined_call_operand.hbm [shape: f32[128,128], index: 1, kind: input, shape index: {}]   ;;  %s1000_s2 = inlined_call_operand.hbm [shape: f32[128,128], index: 2, kind: input, shape index: {}]   ;;  %s1001_s3 = inlined_call_operand.hbm [shape: f32[8,128], index: 3, kind: input, shape index: {}]   ;;  %s1002_s4 = inlined_call_operand.hbm [shape: f32[32,128], index: 4, kind: output, shape index: {}]  }
   0x1   :  { %10 = vsyncpa [#allocation6], 0 }
   0x2   :  { %11 = vsyncpa [#allocation9], 0 }
   0x3   :  { %12 = vsyncpa [#allocation4], 0  ;;  %s30_s17 = sshll.u32 %s999_s1, 4  ;;  %s767_s18 = smov [#allocation5]   ;;  %s31_s17 = int_to_ptr.hbm [resolvable:$true] %s30_s17 }
   0x4   :  { %s32_s19 = sshll.u32 %s767_s18, 4  ;;  %s17_s22 = sshll.u32 %s998_s0, 4  ;;  %s33_s19 = int_to_ptr.vmem [resolvable:$true] %s32_s19  ;;  %s18_s22 = int_to_ptr.hbm [resolvable:$true] %s17_s22 }
   0x5   :  { %s768_s23 = smov 128   ;;  %s769_s24 = smov 8  }
   0x6   :  { %38 = dma.hbm_to_vmem [thread:$0]  %s31_s17, 2048, %s33_s19, [#allocation6], %s768_s23, %s768_s23, %s769_s24  }
   0x7   :  { %s770_s25 = smov [#allocation2]   ;;  %s43_s1 = sshll.u32 %s1000_s2, 4  ;;  %s44_s1 = int_to_ptr.hbm [resolvable:$true] %s43_s1 }
   0x8   :  { %s19_s26 = sshll.u32 %s770_s25, 4  ;;  %s57_s30 = sshll.u32 %s1001_s3, 4  ;;  %s20_s26 = int_to_ptr.vmem [resolvable:$true] %s19_s26  ;;  %s58_s30 = int_to_ptr.hbm [resolvable:$true] %s57_s30 }
   0x9   :  { %25 = dma.hbm_to_vmem [thread:$0]  %s18_s22, 512, %s20_s26, [#allocation3], %s768_s23, %s768_s23, %s769_s24  }
   0xa   :  { %s771_s5 = smov [#allocation7]   ;;  %s772_s7 = smov [#allocation8]  }
   0xb   :  { %s45_s6 = sshll.u32 %s771_s5, 4  ;;  %s59_s2 = sshll.u32 %s772_s7, 4  ;;  %s46_s6 = int_to_ptr.vmem [resolvable:$true] %s45_s6  ;;  %s60_s2 = int_to_ptr.vmem [resolvable:$true] %s59_s2 }
   0xc   :  { %51 = dma.hbm_to_vmem [thread:$0]  %s44_s1, 2048, %s46_s6, [#allocation6], %s768_s23, %s768_s23, %s769_s24  }
   0xd   :  { %62 = dma.hbm_to_vmem [thread:$0]  %s58_s30, 128, %s60_s2, [#allocation9]  }
   0xe   :  { %759 = dma.done.wait [#allocation3], 512  }
   0xf   :  { %760 = vsyncadd [#allocation3], 4294966784 }
  0x10   :  { %761 = dma.done.wait [#allocation6], 4096  }
  0x11   :  { %762 = vsyncadd [#allocation6], 4294963200 }
  0x12   :  { %763 = dma.done.wait [#allocation9], 128  }
  0x13   :  { %764 = vsyncadd [#allocation9], 4294967168  ;;  %v104_v0 = vld [vmem:[#allocation5 + $0x78] sm:$0xff]  ;;  %v103_v1 = vld [vmem:[#allocation5 + $0x70] sm:$0xff]  ;;  %s773_s3 = smov [#allocation10]   ;;  %s551_s11 = sshll.u32 %s1002_s4, 4  ;;  %s552_s11 = int_to_ptr.hbm [resolvable:$true] %s551_s11 }
  0x14   :  { %570 = vmatpush.msra.mxu2 %v104_v0  ;;  %106 = vmatpush.msra.mxu0 %v104_v0  ;;  %v102_v2 = vld [vmem:[#allocation5 + $0x68] sm:$0xff]  ;;  %v101_v3 = vld [vmem:[#allocation5 + $0x60] sm:$0xff]  ;;  %v100_v4 = vld [vmem:[#allocation5 + $0x58] sm:$0xff]  ;;  %s549_s8 = sshll.u32 %s773_s3, 4  ;;  %s550_s8 = int_to_ptr.vmem [resolvable:$true] %s549_s8 }
  0x15   :  { %v99_v5 = vld [vmem:[#allocation5 + $0x50] sm:$0xff]  ;;  %v98_v6 = vld [vmem:[#allocation5 + $0x48] sm:$0xff]  ;;  %v97_v7 = vld [vmem:[#allocation5 + $0x40] sm:$0xff] }
  0x16   :  { %571 = vmatpush.msra.mxu2 %v103_v1  ;;  %107 = vmatpush.msra.mxu0 %v103_v1  ;;  %v96_v8 = vld [vmem:[#allocation5 + $0x38] sm:$0xff]  ;;  %v95_v9 = vld [vmem:[#allocation5 + $0x30] sm:$0xff]  ;;  %v94_v10 = vld [vmem:[#allocation5 + $0x28] sm:$0xff] }
  0x17   :  { %v93_v11 = vld [vmem:[#allocation5 + $0x20] sm:$0xff]  ;;  %v92_v12 = vld [vmem:[#allocation5 + $0x18] sm:$0xff]  ;;  %v91_v13 = vld [vmem:[#allocation5 + $0x10] sm:$0xff] }
  0x18   :  { %572 = vmatpush.msra.mxu2 %v102_v2  ;;  %108 = vmatpush.msra.mxu0 %v102_v2  ;;  %v90_v14 = vld [vmem:[#allocation5 + $0x8] sm:$0xff]  ;;  %v89_v15 = vld [vmem:[#allocation5] sm:$0xff]  ;;  %v820_v16 = vld [vmem:[#allocation2 + $0x10] sm:$0xff] }
  0x19   :  { %v822_v17 = vld [vmem:[#allocation2] sm:$0xff]  ;;  %v826_v18 = vld [vmem:[#allocation2 + $0x18] sm:$0xff]  ;;  %v828_v19 = vld [vmem:[#allocation2 + $0x8] sm:$0xff] }
  0x1a   :  { %573 = vmatpush.msra.mxu2 %v101_v3  ;;  %109 = vmatpush.msra.mxu0 %v101_v3  ;;  %v609_v20 = vld [vmem:[#allocation8] ss:$0 sm:$0xff]  ;;  %v416_v48 = vld [vmem:[#allocation7 + $0x78] sm:$0xff]  ;;  %v415_v49 = vld [vmem:[#allocation7 + $0x70] sm:$0xff] }
  0x1b   :  { %586 = vmatpush.msra.mxu3 %v416_v48  ;;  %418 = vmatpush.msra.mxu1 %v416_v48  ;;  %v414_v52 = vld [vmem:[#allocation7 + $0x68] sm:$0xff]  ;;  %v413_v55 = vld [vmem:[#allocation7 + $0x60] sm:$0xff]  ;;  %v412_v60 = vld [vmem:[#allocation7 + $0x58] sm:$0xff] }
  0x1c   :  { %574 = vmatpush.msra.mxu2 %v100_v4  ;;  %110 = vmatpush.msra.mxu0 %v100_v4  ;;  %v411_v62 = vld [vmem:[#allocation7 + $0x50] sm:$0xff]  ;;  %v410_v1 = vld [vmem:[#allocation7 + $0x48] sm:$0xff]  ;;  %v409_v4 = vld [vmem:[#allocation7 + $0x40] sm:$0xff] }
  0x1d   :  { %587 = vmatpush.msra.mxu3 %v415_v49  ;;  %419 = vmatpush.msra.mxu1 %v415_v49 }
  0x1e   :  { %575 = vmatpush.msra.mxu2 %v99_v5  ;;  %111 = vmatpush.msra.mxu0 %v99_v5 }
  0x1f   :  { %588 = vmatpush.msra.mxu3 %v414_v52  ;;  %420 = vmatpush.msra.mxu1 %v414_v52  ;;  %v401_v52 = vld [vmem:[#allocation7] sm:$0xff] }
  0x20   :  { %576 = vmatpush.msra.mxu2 %v98_v6  ;;  %112 = vmatpush.msra.mxu0 %v98_v6 }
  0x21   :  { %589 = vmatpush.msra.mxu3 %v413_v55  ;;  %421 = vmatpush.msra.mxu1 %v413_v55 }
  0x22   :  { %577 = vmatpush.msra.mxu2 %v97_v7  ;;  %113 = vmatpush.msra.mxu0 %v97_v7 }
  0x23   :  { %590 = vmatpush.msra.mxu3 %v412_v60  ;;  %422 = vmatpush.msra.mxu1 %v412_v60 }
  0x24   :  { %578 = vmatpush.msra.mxu2 %v96_v8  ;;  %114 = vmatpush.msra.mxu0 %v96_v8 }
  0x25   :  { %591 = vmatpush.msra.mxu3 %v411_v62  ;;  %423 = vmatpush.msra.mxu1 %v411_v62 }
  0x26   :  { %579 = vmatpush.msra.mxu2 %v95_v9  ;;  %115 = vmatpush.msra.mxu0 %v95_v9 }
  0x27   :  { %592 = vmatpush.msra.mxu3 %v410_v1  ;;  %424 = vmatpush.msra.mxu1 %v410_v1 }
  0x28   :  { %580 = vmatpush.msra.mxu2 %v94_v10  ;;  %116 = vmatpush.msra.mxu0 %v94_v10  ;;  %v408_v10 = vld [vmem:[#allocation7 + $0x38] sm:$0xff] }
  0x29   :  { %593 = vmatpush.msra.mxu3 %v409_v4  ;;  %425 = vmatpush.msra.mxu1 %v409_v4 }
  0x2a   :  { %581 = vmatpush.msra.mxu2 %v93_v11  ;;  %117 = vmatpush.msra.mxu0 %v93_v11 }
  0x2b   :  { %594 = vmatpush.msra.mxu3 %v408_v10  ;;  %426 = vmatpush.msra.mxu1 %v408_v10 }
  0x2c   :  { %582 = vmatpush.msra.mxu2 %v92_v12  ;;  %118 = vmatpush.msra.mxu0 %v92_v12  ;;  %v859_v12 = vld [vmem:[#allocation8 + $0x1] ss:$0 sm:$0xff] }
  0x2e   :  { %583 = vmatpush.msra.mxu2 %v91_v13  ;;  %119 = vmatpush.msra.mxu0 %v91_v13 }
  0x30   :  { %584 = vmatpush.msra.mxu2 %v90_v14  ;;  %120 = vmatpush.msra.mxu0 %v90_v14 }
  0x32   :  { %585 = vmatpush.msra.mxu2 %v89_v15  ;;  %121 = vmatpush.msra.mxu0 %v89_v15  ;;  %v407_v15 = vld [vmem:[#allocation7 + $0x30] sm:$0xff] }
  0x33   :  { %128 = vmatmul.f32.vlgmr.msra.gmra.mxu2 %v820_v16  ;;  %122 = vmatmul.f32.vlgmr.msra.gmra.mxu0 %v822_v17 }
  0x34   :  { %595 = vmatpush.msra.mxu3 %v407_v15  ;;  %427 = vmatpush.msra.mxu1 %v407_v15 }
  0x3b   :  { %131 = vmatmul.f32.gmra.mxu2 %v826_v18  ;;  %125 = vmatmul.f32.gmra.mxu0 %v828_v19 }
  0xb0   :  { %v123_v23 = vpop.f32.mrf.mxu0 }
  0xb1   :  { %v124_v24 = vadd.f32 %v609_v20, %v123_v23 }
  0xb6   :  { %v129_v21 = vpop.f32.mrf.mxu2 }
  0xb7   :  { %v130_v22 = vadd.f32 %v609_v20, %v129_v21 }
  0xb8   :  { %v126_v27 = vpop.f32.mrf.mxu0 }
  0xb9   :  { %139 = vadd.xlane.f32.xlu0 %v130_v22  ;;  %v127_v28 = vadd.f32 %v609_v20, %v126_v27 }
  0xbe   :  { %v132_v25 = vpop.f32.mrf.mxu2 }
  0xbf   :  { %v133_v26 = vadd.f32 %v609_v20, %v132_v25 }
  0xc1   :  { %141 = vadd.xlane.f32.xlu1 %v133_v26  ;;  %135 = vadd.xlane.f32.xlu0 %v124_v24 }
  0xc9   :  { %137 = vadd.xlane.f32.xlu1 %v127_v28 }
 0x12c   :  { %v140_v29 = vpop.xlane.xlu0 %139 }
 0x12d   :  { %v145_v30 = vmul.f32 0.0078125, %v140_v29 }
 0x12f   :  { %v832_v31 = vsub.f32 %v130_v22, %v145_v30  ;;  %v862_v22 = vld [vmem:[#allocation8 + $0x2] ss:$0 sm:$0xff] }
 0x131   :  { %v153_v32 = vmul.f32 %v832_v31, %v832_v31 }
 0x133   :  { %159 = vadd.xlane.f32.xlu2 %v153_v32 }
 0x134   :  { %v142_v33 = vpop.xlane.xlu1 %141  ;;  %v136_v34 = vpop.xlane.xlu0 %135 }
 0x135   :  { %v146_v35 = vmul.f32 0.0078125, %v142_v33  ;;  %v143_v36 = vmul.f32 0.0078125, %v136_v34  ;;  %v404_v34 = vld [vmem:[#allocation7 + $0x18] sm:$0xff] }
 0x137   :  { %v836_v37 = vsub.f32 %v133_v26, %v146_v35  ;;  %v838_v38 = vsub.f32 %v124_v24, %v143_v36  ;;  %v406_v24 = vld [vmem:[#allocation7 + $0x28] sm:$0xff] }
 0x138   :  { %596 = vmatpush.msra.mxu3 %v406_v24  ;;  %428 = vmatpush.msra.mxu1 %v406_v24 }
 0x139   :  { %v154_v39 = vmul.f32 %v836_v37, %v836_v37  ;;  %v151_v40 = vmul.f32 %v838_v38, %v838_v38 }
 0x13b   :  { %161 = vadd.xlane.f32.xlu0 %v154_v39  ;;  %155 = vadd.xlane.f32.xlu2 %v151_v40 }
 0x13c   :  { %v138_v41 = vpop.xlane.xlu1 %137 }
 0x13d   :  { %v144_v42 = vmul.f32 0.0078125, %v138_v41  ;;  %v403_v41 = vld [vmem:[#allocation7 + $0x10] sm:$0xff] }
 0x13f   :  { %v844_v43 = vsub.f32 %v127_v28, %v144_v42  ;;  %v405_v28 = vld [vmem:[#allocation7 + $0x20] sm:$0xff] }
 0x140   :  { %597 = vmatpush.msra.mxu3 %v405_v28  ;;  %429 = vmatpush.msra.mxu1 %v405_v28 }
 0x141   :  { %v152_v44 = vmul.f32 %v844_v43, %v844_v43 }
 0x142   :  { %598 = vmatpush.msra.mxu3 %v404_v34  ;;  %430 = vmatpush.msra.mxu1 %v404_v34 }
 0x143   :  { %157 = vadd.xlane.f32.xlu1 %v152_v44 }
 0x144   :  { %599 = vmatpush.msra.mxu3 %v403_v41  ;;  %431 = vmatpush.msra.mxu1 %v403_v41 }
 0x1a6   :  { %v160_v45 = vpop.xlane.xlu2 %159 }
 0x1a7   :  { %v165_v46 = vmul.f32 0.0078125, %v160_v45 }
 0x1a9   :  { %v169_v47 = vadd.f32 1e-05, %v165_v46 }
 0x1ab   :  { %615 = vrsqrt.f32 %v169_v47  ;;  %vm197_vm1 = vweird.f32 %v169_v47 }
 0x1ae   :  { %v156_v50 = vpop.xlane.xlu2 %155  ;;  %v162_v51 = vpop.xlane.xlu0 %161 }
 0x1af   :  { %v163_v53 = vmul.f32 0.0078125, %v156_v50  ;;  %v166_v54 = vmul.f32 0.0078125, %v162_v51 }
 0x1b1   :  { %v616_v56 = vpop.eup %615  ;;  %v848_v57 = vadd.f32 1e-05, %v163_v53  ;;  %v850_v58 = vadd.f32 1e-05, %v166_v54 }
 0x1b2   :  { %v192_v59 = vmul.f32 %v616_v56, %v169_v47  ;;  %vm198_vm0 = vweird.f32 %v616_v56  ;;  %v402_v47 = vld [vmem:[#allocation7 + $0x8] sm:$0xff] }
 0x1b3   :  { %617 = vrsqrt.f32 %v848_v57  ;;  %vm199_vm2 = vmor %vm197_vm1, %vm198_vm0  ;;  %vm177_vm5 = vweird.f32 %v848_v57  ;;  %vm207_vm7 = vweird.f32 %v850_v58  ;;  %600 = vmatpush.msra.mxu3 %v402_v47  ;;  %432 = vmatpush.msra.mxu1 %v402_v47 }
 0x1b4   :  { %v193_v61 = vmul.f32 %v616_v56, %v192_v59  ;;  %619 = vrsqrt.f32 %v850_v58 }
 0x1b5   :  { %601 = vmatpush.msra.mxu3 %v401_v52  ;;  %433 = vmatpush.msra.mxu1 %v401_v52 }
 0x1b6   :  { %v194_v63 = vmul.f32 0.5, %v193_v61  ;;  %v158_v0 = vpop.xlane.xlu1 %157 }
 0x1b7   :  { %v164_v2 = vmul.f32 0.0078125, %v158_v0 }
 0x1b8   :  { %v195_v3 = vsub.f32 1.5, %v194_v63 }
 0x1b9   :  { %v618_v5 = vpop.eup %617  ;;  %v854_v6 = vadd.f32 1e-05, %v164_v2 }
 0x1ba   :  { %v620_v7 = vpop.eup %619  ;;  %v196_v8 = vmul.f32 %v616_v56, %v195_v3  ;;  %v172_v9 = vmul.f32 %v618_v5, %v848_v57  ;;  %vm178_vm3 = vweird.f32 %v618_v5 }
 0x1bb   :  { %v202_v11 = vmul.f32 %v620_v7, %v850_v58  ;;  %621 = vrsqrt.f32 %v854_v6  ;;  %vm208_vm4 = vweird.f32 %v620_v7  ;;  %vm179_vm6 = vmor %vm177_vm5, %vm178_vm3  ;;  %vm187_vm10 = vweird.f32 %v854_v6 }
 0x1bc   :  { %v200_v13 = vsel %vm199_vm2, %v616_v56, %v196_v8  ;;  %v173_v14 = vmul.f32 %v618_v5, %v172_v9  ;;  %vm209_vm8 = vmor %vm207_vm7, %vm208_vm4 }
 0x1bd   :  { %v203_v20 = vmul.f32 %v620_v7, %v202_v11  ;;  %v213_v21 = vmul.f32 %v200_v13, %v832_v31 }
 0x1be   :  { %v174_v23 = vmul.f32 0.5, %v173_v14 }
 0x1bf   :  { %v204_v25 = vmul.f32 0.5, %v203_v20  ;;  %v218_v26 = vmul.f32 %v859_v12, %v213_v21 }
 0x1c0   :  { %v175_v27 = vsub.f32 1.5, %v174_v23 }
 0x1c1   :  { %v622_v29 = vpop.eup %621  ;;  %v205_v30 = vsub.f32 1.5, %v204_v25  ;;  %v866_v32 = vadd.f32 %v862_v22, %v218_v26 }
 0x1c2   :  { %v176_v31 = vmul.f32 %v618_v5, %v175_v27  ;;  %v182_v33 = vmul.f32 %v622_v29, %v854_v6  ;;  %vm188_vm9 = vweird.f32 %v622_v29 }
 0x1c3   :  { %v206_v35 = vmul.f32 %v620_v7, %v205_v30  ;;  %v872_v36 = vmul.f32 0.70710677, %v866_v32  ;;  %vm189_vm11 = vmor %vm187_vm10, %vm188_vm9 }
 0x1c4   :  { %v180_v39 = vsel %vm179_vm6, %v618_v5, %v176_v31  ;;  %v183_v40 = vmul.f32 %v622_v29, %v182_v33 }
 0x1c5   :  { %v210_v42 = vsel %vm209_vm8, %v620_v7, %v206_v35  ;;  %v313_v44 = vmul.f32 %v872_v36, %v872_v36  ;;  %v211_v45 = vmul.f32 %v180_v39, %v838_v38 }
 0x1c6   :  { %v184_v46 = vmul.f32 0.5, %v183_v40  ;;  %v214_v48 = vmul.f32 %v210_v42, %v836_v37 }
 0x1c7   :  { %v879_v49 = vmin.f32 %v313_v44, 16.0  ;;  %v216_v50 = vmul.f32 %v859_v12, %v211_v45 }
 0x1c8   :  { %v185_v51 = vsub.f32 1.5, %v184_v46  ;;  %v219_v53 = vmul.f32 %v859_v12, %v214_v48 }
 0x1c9   :  { %v315_v54 = vmul.f32 2.1237322e-06, %v879_v49  ;;  %v326_v38 = vmul.f32 3.8918573e-05, %v879_v49  ;;  %v886_v55 = vadd.f32 %v862_v22, %v216_v50 }
 0x1ca   :  { %v186_v37 = vmul.f32 %v622_v29, %v185_v51  ;;  %v890_v56 = vadd.f32 %v862_v22, %v219_v53 }
 0x1cb   :  { %v316_v57 = vadd.f32 0.00028619796, %v315_v54  ;;  %v327_v58 = vadd.f32 0.001143296, %v326_v38  ;;  %v893_v60 = vmul.f32 0.70710677, %v886_v55 }
 0x1cc   :  { %v190_v59 = vsel %vm189_vm11, %v622_v29, %v186_v37  ;;  %v896_v61 = vmul.f32 0.70710677, %v890_v56 }
 0x1cd   :  { %v317_v62 = vmul.f32 %v316_v57, %v879_v49  ;;  %v328_v63 = vmul.f32 %v327_v58, %v879_v49  ;;  %v212_v0 = vmul.f32 %v190_v59, %v844_v43  ;;  %v233_v1 = vmul.f32 %v893_v60, %v893_v60 }
 0x1ce   :  { %v353_v2 = vmul.f32 %v896_v61, %v896_v61 }
 0x1cf   :  { %v318_v3 = vadd.f32 0.0036580483, %v317_v62  ;;  %v329_v4 = vadd.f32 0.014752088, %v328_v63  ;;  %v217_v5 = vmul.f32 %v859_v12, %v212_v0  ;;  %v906_v6 = vmin.f32 %v233_v1, 16.0 }
 0x1d0   :  { %v908_v7 = vmin.f32 %v353_v2, 16.0 }
 0x1d1   :  { %v319_v8 = vmul.f32 %v318_v3, %v879_v49  ;;  %v330_v9 = vmul.f32 %v329_v4, %v879_v49  ;;  %v235_v43 = vmul.f32 2.1237322e-06, %v906_v6  ;;  %v246_v10 = vmul.f32 3.8918573e-05, %v906_v6 }
 0x1d2   :  { %v355_v11 = vmul.f32 2.1237322e-06, %v908_v7  ;;  %v916_v13 = vadd.f32 %v862_v22, %v217_v5  ;;  %v366_v12 = vmul.f32 3.8918573e-05, %v908_v7 }
 0x1d3   :  { %v331_v14 = vadd.f32 0.112945676, %v330_v9  ;;  %v236_v15 = vadd.f32 0.00028619796, %v235_v43  ;;  %v247_v20 = vadd.f32 0.001143296, %v246_v10 }
 0x1d4   :  { %v356_v21 = vadd.f32 0.00028619796, %v355_v11  ;;  %v320_v23 = vadd.f32 0.05243302, %v319_v8  ;;  %v367_v25 = vadd.f32 0.001143296, %v366_v12 }
 0x1d5   :  { %v332_v24 = vmul.f32 %v331_v14, %v879_v49  ;;  %v237_v26 = vmul.f32 %v236_v15, %v906_v6  ;;  %v248_v27 = vmul.f32 %v247_v20, %v906_v6  ;;  %v924_v29 = vmul.f32 0.70710677, %v916_v13 }
 0x1d6   :  { %v357_v28 = vmul.f32 %v356_v21, %v908_v7  ;;  %v368_v30 = vmul.f32 %v367_v25, %v908_v7  ;;  %v321_v41 = vmul.f32 %v320_v23, %v879_v49 }
 0x1d7   :  { %v333_v22 = vadd.f32 0.4994258, %v332_v24  ;;  %v238_v31 = vadd.f32 0.0036580483, %v237_v26  ;;  %v249_v33 = vadd.f32 0.014752088, %v248_v27  ;;  %v273_v35 = vmul.f32 %v924_v29, %v924_v29 }
 0x1d8   :  { %v358_v34 = vadd.f32 0.0036580483, %v357_v28  ;;  %v369_v40 = vadd.f32 0.014752088, %v368_v30  ;;  %v322_v51 = vadd.f32 0.18741608, %v321_v41 }
 0x1d9   :  { %v334_v39 = vmul.f32 %v333_v22, %v879_v49  ;;  %v250_v42 = vmul.f32 %v249_v33, %v906_v6  ;;  %v239_v45 = vmul.f32 %v238_v31, %v906_v6  ;;  %v934_v47 = vmin.f32 %v273_v35, 16.0 }
 0x1da   :  { %v370_v46 = vmul.f32 %v369_v40, %v908_v7  ;;  %v359_v50 = vmul.f32 %v358_v34, %v908_v7  ;;  %v323_v62 = vmul.f32 %v322_v51, %v879_v49 }
 0x1db   :  { %v335_v44 = vadd.f32 1.0, %v334_v39  ;;  %v251_v48 = vadd.f32 0.112945676, %v250_v42  ;;  %v240_v53 = vadd.f32 0.05243302, %v239_v45 }
 0x1dc   :  { %v371_v54 = vadd.f32 0.112945676, %v370_v46  ;;  %v275_v38 = vmul.f32 2.1237322e-06, %v934_v47  ;;  %v360_v57 = vadd.f32 0.05243302, %v359_v50 }
 0x1dd   :  { %623 = vrcp.f32 %v335_v44  ;;  %v252_v52 = vmul.f32 %v251_v48, %v906_v6  ;;  %v286_v59 = vmul.f32 3.8918573e-05, %v934_v47  ;;  %v241_v2 = vmul.f32 %v240_v53, %v906_v6 }
 0x1de   :  { %v372_v58 = vmul.f32 %v371_v54, %v908_v7  ;;  %v276_v0 = vadd.f32 0.00028619796, %v275_v38  ;;  %v361_v9 = vmul.f32 %v360_v57, %v908_v7  ;;  %v324_v11 = vadd.f32 1.1283791, %v323_v62 }
 0x1df   :  { %v253_v37 = vadd.f32 0.4994258, %v252_v52  ;;  %v287_v4 = vadd.f32 0.001143296, %v286_v59  ;;  %v345_v12 = vand.u32 2147483647, %v335_v44  ;;  %vm341_vm13 = vweird.f32 %v335_v44 }
 0x1e0   :  { %v373_v3 = vadd.f32 0.4994258, %v372_v58  ;;  %v277_v49 = vmul.f32 %v276_v0, %v934_v47  ;;  %v347_v15 = vand.u32 2147483648, %v335_v44  ;;  %v242_v20 = vadd.f32 0.18741608, %v241_v2 }
 0x1e1   :  { %v254_v63 = vmul.f32 %v253_v37, %v906_v6  ;;  %v288_v10 = vmul.f32 %v287_v4, %v934_v47  ;;  %v362_v24 = vadd.f32 0.18741608, %v361_v9  ;;  %v325_v28 = vmul.f32 %v324_v11, %v872_v36 }
 0x1e2   :  { %v374_v43 = vmul.f32 %v373_v3, %v908_v7  ;;  %v278_v27 = vadd.f32 0.0036580483, %v277_v49  ;;  %v348_v22 = vor.u32 1.1754944e-38, %v347_v15  ;;  %vm346_vm15 = vcmp.eq.f32.partialorder %v345_v12, 8.507059e+37 }
 0x1e3   :  { %v624_v1 = vpop.eup %623  ;;  %v944_v8 = vadd.f32 1.0, %v254_v63  ;;  %v289_v25 = vadd.f32 0.014752088, %v288_v10  ;;  %v243_v34 = vmul.f32 %v242_v20, %v906_v6  ;;  %v363_v35 = vmul.f32 %v362_v24, %v908_v7 }
 0x1e4   :  { %v337_v5 = vmul.f32 %v624_v1, %v335_v44  ;;  %v951_v21 = vadd.f32 1.0, %v374_v43  ;;  %vm342_vm12 = vweird.f32 %v624_v1  ;;  %v279_v44 = vmul.f32 %v278_v27, %v934_v47 }
 0x1e5   :  { %625 = vrcp.f32 %v944_v8  ;;  %vm343_vm14 = vmor %vm341_vm13, %vm342_vm12  ;;  %v290_v30 = vmul.f32 %v289_v25, %v934_v47  ;;  %v227_v36 = vmul.f32 0.5, %v866_v32  ;;  %v267_v48 = vand.u32 2147483648, %v944_v8 }
 0x1e6   :  { %v338_v14 = vsub.f32 1.0, %v337_v5  ;;  %627 = vrcp.f32 %v951_v21  ;;  %v244_v52 = vadd.f32 1.1283791, %v243_v34  ;;  %v364_v6 = vadd.f32 1.1283791, %v363_v35 }
 0x1e7   :  { %v291_v41 = vadd.f32 0.112945676, %v290_v30  ;;  %v265_v54 = vand.u32 2147483647, %v944_v8  ;;  %vm261_vm1 = vweird.f32 %v944_v8  ;;  %v280_v32 = vadd.f32 0.05243302, %v279_v44 }
 0x1e8   :  { %v339_v23 = vmul.f32 %v624_v1, %v338_v14  ;;  %v268_v59 = vor.u32 1.1754944e-38, %v267_v48  ;;  %v387_v62 = vand.u32 2147483648, %v951_v21  ;;  %v385_v2 = vand.u32 2147483647, %v951_v21  ;;  %v612_v48 = vld [vmem:[#allocation8 + $0x3] ss:$0 sm:$0xff] }
 0x1e9   :  { %v292_v50 = vmul.f32 %v291_v41, %v934_v47  ;;  %v245_v3 = vmul.f32 %v244_v52, %v893_v60  ;;  %vm266_vm4 = vcmp.eq.f32.partialorder %v265_v54, 8.507059e+37  ;;  %vm381_vm5 = vweird.f32 %v951_v21 }
 0x1ea   :  { %v340_v26 = vadd.f32 %v624_v1, %v339_v23  ;;  %v281_v43 = vmul.f32 %v280_v32, %v934_v47  ;;  %v388_v11 = vor.u32 1.1754944e-38, %v387_v62  ;;  %v365_v14 = vmul.f32 %v364_v6, %v896_v61 }
 0x1eb   :  { %v626_v31 = vpop.eup %625  ;;  %v293_v38 = vadd.f32 0.4994258, %v292_v50  ;;  %vm386_vm7 = vcmp.eq.f32.partialorder %v385_v2, 8.507059e+37  ;;  %v225_v23 = vmul.f32 0.5, %v886_v55  ;;  %v228_v27 = vmul.f32 0.5, %v890_v56 }
 0x1ec   :  { %v344_v33 = vsel %vm343_vm14, %v624_v1, %v340_v26  ;;  %v257_v40 = vmul.f32 %v626_v31, %v944_v8  ;;  %v628_v45 = vpop.eup %627  ;;  %vm262_vm0 = vweird.f32 %v626_v31  ;;  %v282_v20 = vadd.f32 0.18741608, %v281_v43 }
 0x1ed   :  { %v349_v39 = vsel %vm346_vm15, %v348_v22, %v344_v33  ;;  %v377_v7 = vmul.f32 %v628_v45, %v951_v21  ;;  %v294_v63 = vmul.f32 %v293_v38, %v934_v47  ;;  %vm263_vm2 = vmor %vm261_vm1, %vm262_vm0  ;;  %vm382_vm3 = vweird.f32 %v628_v45 }
 0x1ee   :  { %v350_v42 = vmul.f32 %v349_v39, %v325_v28  ;;  %v258_v46 = vsub.f32 1.0, %v257_v40  ;;  %vm383_vm6 = vmor %vm381_vm5, %vm382_vm3  ;;  %v283_v22 = vmul.f32 %v282_v20, %v934_v47 }
 0x1ef   :  { %v378_v57 = vsub.f32 1.0, %v377_v7  ;;  %v295_v5 = vadd.f32 1.0, %v294_v63 }
 0x1f0   :  { %v568_v51 = vclamps-f32 %v350_v42, 1.0  ;;  %v259_v53 = vmul.f32 %v626_v31, %v258_v46  ;;  %v284_v34 = vadd.f32 1.1283791, %v283_v22 }
 0x1f1   :  { %v379_v1 = vmul.f32 %v628_v45, %v378_v57  ;;  %629 = vrcp.f32 %v295_v5  ;;  %v307_v33 = vand.u32 2147483648, %v295_v5  ;;  %v305_v39 = vand.u32 2147483647, %v295_v5 }
 0x1f2   :  { %v395_v37 = vadd.f32 1.0, %v568_v51  ;;  %v260_v58 = vadd.f32 %v626_v31, %v259_v53  ;;  %vm301_vm9 = vweird.f32 %v295_v5  ;;  %v285_v41 = vmul.f32 %v284_v34, %v924_v29 }
 0x1f3   :  { %v380_v9 = vadd.f32 %v628_v45, %v379_v1  ;;  %v308_v40 = vor.u32 1.1754944e-38, %v307_v33  ;;  %vm306_vm11 = vcmp.eq.f32.partialorder %v305_v39, 8.507059e+37 }
 0x1f4   :  { %v399_v0 = vmul.f32 %v395_v37, %v227_v36  ;;  %v264_v4 = vsel %vm263_vm2, %v626_v31, %v260_v58 }
 0x1f5   :  { %v269_v8 = vsel %vm266_vm4, %v268_v59, %v264_v4  ;;  %v384_v49 = vsel %vm383_vm6, %v628_v45, %v380_v9  ;;  %v226_v45 = vmul.f32 0.5, %v916_v13 }
 0x1f6   :  { %440 = vmatmul.f32.vlgmr.msra.gmra.mxu3 %v399_v0  ;;  %v270_v10 = vmul.f32 %v269_v8, %v245_v3  ;;  %v389_v60 = vsel %vm386_vm7, %v388_v11, %v384_v49 }
 0x1f7   :  { %v390_v15 = vmul.f32 %v389_v60, %v365_v14  ;;  %v630_v26 = vpop.eup %629 }
 0x1f8   :  { %v566_v12 = vclamps-f32 %v270_v10, 1.0  ;;  %v297_v30 = vmul.f32 %v630_v26, %v295_v5  ;;  %vm302_vm8 = vweird.f32 %v630_v26 }
 0x1f9   :  { %v569_v25 = vclamps-f32 %v390_v15, 1.0  ;;  %vm303_vm10 = vmor %vm301_vm9, %vm302_vm8 }
 0x1fa   :  { %v393_v24 = vadd.f32 1.0, %v566_v12  ;;  %v298_v31 = vsub.f32 1.0, %v297_v30 }
 0x1fb   :  { %v396_v28 = vadd.f32 1.0, %v569_v25 }
 0x1fc   :  { %v397_v21 = vmul.f32 %v393_v24, %v225_v23  ;;  %v299_v35 = vmul.f32 %v630_v26, %v298_v31  ;;  %v613_v31 = vld [vmem:[#allocation8 + $0x4] ss:$0 sm:$0xff] }
 0x1fd   :  { %v400_v61 = vmul.f32 %v396_v28, %v228_v27 }
 0x1fe   :  { %434 = vmatmul.f32.vlgmr.msra.gmra.mxu1 %v397_v21  ;;  %v300_v55 = vadd.f32 %v630_v26, %v299_v35 }
 0x1ff   :  { %443 = vmatmul.f32.gmra.mxu3 %v400_v61 }
 0x200   :  { %v304_v56 = vsel %vm303_vm10, %v630_v26, %v300_v55  ;;  %v614_v55 = vld [vmem:[#allocation8 + $0x5] ss:$0 sm:$0xff] }
 0x201   :  { %v309_v42 = vsel %vm306_vm11, %v308_v40, %v304_v56 }
 0x202   :  { %v310_v47 = vmul.f32 %v309_v42, %v285_v41 }
 0x204   :  { %v567_v44 = vclamps-f32 %v310_v47, 1.0 }
 0x206   :  { %v394_v36 = vadd.f32 1.0, %v567_v44 }
 0x208   :  { %v398_v46 = vmul.f32 %v394_v36, %v226_v45 }
 0x20a   :  { %437 = vmatmul.f32.gmra.mxu1 %v398_v46 }
 0x279   :  { %v441_v50 = vpop.f32.mrf.mxu3 }
 0x27a   :  { %v442_v51 = vadd.f32 %v612_v48, %v441_v50 }
 0x27b   :  { %v435_v52 = vpop.f32.mrf.mxu1 }
 0x27c   :  { %451 = vadd.xlane.f32.xlu1 %v442_v51  ;;  %v436_v6 = vadd.f32 %v612_v48, %v435_v52 }
 0x27e   :  { %447 = vadd.xlane.f32.xlu2 %v436_v6 }
 0x282   :  { %v444_v7 = vpop.f32.mrf.mxu3 }
 0x283   :  { %v445_v53 = vadd.f32 %v612_v48, %v444_v7 }
 0x286   :  { %453 = vadd.xlane.f32.xlu2 %v445_v53 }
 0x287   :  { %v438_v29 = vpop.f32.mrf.mxu1 }
 0x288   :  { %v439_v54 = vadd.f32 %v612_v48, %v438_v29 }
 0x28a   :  { %449 = vadd.xlane.f32.xlu0 %v439_v54 }
 0x2ef   :  { %v452_v38 = vpop.xlane.xlu1 %451 }
 0x2f0   :  { %v457_v37 = vmul.f32 0.0078125, %v452_v38 }
 0x2f1   :  { %v448_v13 = vpop.xlane.xlu2 %447 }
 0x2f2   :  { %v461_v57 = vsub.f32 %v442_v51, %v457_v37  ;;  %v455_v32 = vmul.f32 0.0078125, %v448_v13 }
 0x2f4   :  { %v465_v58 = vmul.f32 %v461_v57, %v461_v57  ;;  %v459_v59 = vsub.f32 %v436_v6, %v455_v32 }
 0x2f6   :  { %471 = vadd.xlane.f32.xlu2 %v465_v58  ;;  %v463_v62 = vmul.f32 %v459_v59, %v459_v59 }
 0x2f8   :  { %467 = vadd.xlane.f32.xlu0 %v463_v62 }
 0x2f9   :  { %v454_v63 = vpop.xlane.xlu2 %453 }
 0x2fa   :  { %v458_v0 = vmul.f32 0.0078125, %v454_v63 }
 0x2fc   :  { %v978_v1 = vsub.f32 %v445_v53, %v458_v0 }
 0x2fd   :  { %v450_v3 = vpop.xlane.xlu0 %449 }
 0x2fe   :  { %v466_v2 = vmul.f32 %v978_v1, %v978_v1  ;;  %v456_v4 = vmul.f32 0.0078125, %v450_v3 }
 0x300   :  { %473 = vadd.xlane.f32.xlu0 %v466_v2  ;;  %v982_v5 = vsub.f32 %v439_v54, %v456_v4 }
 0x302   :  { %v464_v8 = vmul.f32 %v982_v5, %v982_v5 }
 0x304   :  { %469 = vadd.xlane.f32.xlu1 %v464_v8 }
 0x369   :  { %v472_v9 = vpop.xlane.xlu2 %471 }
 0x36a   :  { %v477_v43 = vmul.f32 0.0078125, %v472_v9 }
 0x36b   :  { %v468_v11 = vpop.xlane.xlu0 %467 }
 0x36c   :  { %v481_v10 = vadd.f32 1e-05, %v477_v43  ;;  %v475_v14 = vmul.f32 0.0078125, %v468_v11 }
 0x36e   :  { %631 = vrsqrt.f32 %v481_v10  ;;  %v479_v49 = vadd.f32 1e-05, %v475_v14  ;;  %vm509_vm13 = vweird.f32 %v481_v10 }
 0x370   :  { %633 = vrsqrt.f32 %v479_v49  ;;  %vm489_vm0 = vweird.f32 %v479_v49 }
 0x373   :  { %v474_v15 = vpop.xlane.xlu0 %473 }
 0x374   :  { %v632_v12 = vpop.eup %631  ;;  %v478_v20 = vmul.f32 0.0078125, %v474_v15 }
 0x375   :  { %v504_v60 = vmul.f32 %v632_v12, %v481_v10  ;;  %vm510_vm12 = vweird.f32 %v632_v12 }
 0x376   :  { %v634_v23 = vpop.eup %633  ;;  %v482_v26 = vadd.f32 1e-05, %v478_v20  ;;  %vm511_vm14 = vmor %vm509_vm13, %vm510_vm12 }
 0x377   :  { %v505_v24 = vmul.f32 %v632_v12, %v504_v60  ;;  %v484_v25 = vmul.f32 %v634_v23, %v479_v49  ;;  %v470_v61 = vpop.xlane.xlu1 %469  ;;  %vm490_vm15 = vweird.f32 %v634_v23 }
 0x378   :  { %635 = vrsqrt.f32 %v482_v26  ;;  %v476_v34 = vmul.f32 0.0078125, %v470_v61  ;;  %vm491_vm1 = vmor %vm489_vm0, %vm490_vm15  ;;  %vm519_vm3 = vweird.f32 %v482_v26 }
 0x379   :  { %v506_v21 = vmul.f32 0.5, %v505_v24  ;;  %v485_v27 = vmul.f32 %v634_v23, %v484_v25 }
 0x37a   :  { %v480_v56 = vadd.f32 1e-05, %v476_v34 }
 0x37b   :  { %v507_v28 = vsub.f32 1.5, %v506_v21  ;;  %v486_v22 = vmul.f32 0.5, %v485_v27 }
 0x37c   :  { %637 = vrsqrt.f32 %v480_v56  ;;  %vm499_vm6 = vweird.f32 %v480_v56 }
 0x37d   :  { %v508_v30 = vmul.f32 %v632_v12, %v507_v28  ;;  %v487_v33 = vsub.f32 1.5, %v486_v22 }
 0x37e   :  { %v636_v39 = vpop.eup %635 }
 0x37f   :  { %v512_v35 = vsel %vm511_vm14, %v632_v12, %v508_v30  ;;  %v488_v41 = vmul.f32 %v634_v23, %v487_v33  ;;  %v514_v42 = vmul.f32 %v636_v39, %v482_v26  ;;  %vm520_vm2 = vweird.f32 %v636_v39 }
 0x380   :  { %v525_v40 = vmul.f32 %v512_v35, %v461_v57  ;;  %vm521_vm4 = vmor %vm519_vm3, %vm520_vm2 }
 0x381   :  { %v492_v44 = vsel %vm491_vm1, %v634_v23, %v488_v41  ;;  %v515_v36 = vmul.f32 %v636_v39, %v514_v42 }
 0x382   :  { %v530_v47 = vmul.f32 %v613_v31, %v525_v40  ;;  %v523_v45 = vmul.f32 %v492_v44, %v459_v59  ;;  %v638_v7 = vpop.eup %637 }
 0x383   :  { %v516_v50 = vmul.f32 0.5, %v515_v36  ;;  %v494_v53 = vmul.f32 %v638_v7, %v480_v56  ;;  %vm500_vm5 = vweird.f32 %v638_v7 }
 0x384   :  { %v535_v46 = vadd.f32 %v614_v55, %v530_v47  ;;  %v528_v48 = vmul.f32 %v613_v31, %v523_v45  ;;  %vm501_vm7 = vmor %vm499_vm6, %vm500_vm5 }
 0x385   :  { %v517_v6 = vsub.f32 1.5, %v516_v50  ;;  %v495_v38 = vmul.f32 %v638_v7, %v494_v53 }
 0x386   :  { %v539_v51 = vadd.f32 %v535_v46, %v820_v16  ;;  %v533_v52 = vadd.f32 %v614_v55, %v528_v48 }
 0x387   :  { %v518_v29 = vmul.f32 %v636_v39, %v517_v6  ;;  %v496_v13 = vmul.f32 0.5, %v495_v38 }
 0x388   :  { %543 = vst [vmem:[#allocation10 + $0x10] sm:$0xff] %v539_v51  ;;  %v537_v54 = vadd.f32 %v533_v52, %v822_v17 }
 0x389   :  { %v522_v37 = vsel %vm521_vm4, %v636_v39, %v518_v29  ;;  %v497_v58 = vsub.f32 1.5, %v496_v13 }
 0x38a   :  { %541 = vst [vmem:[#allocation10] sm:$0xff] %v537_v54  ;;  %v526_v57 = vmul.f32 %v522_v37, %v978_v1 }
 0x38b   :  { %v498_v59 = vmul.f32 %v638_v7, %v497_v58 }
 0x38c   :  { %v531_v32 = vmul.f32 %v613_v31, %v526_v57 }
 0x38d   :  { %v502_v63 = vsel %vm501_vm7, %v638_v7, %v498_v59 }
 0x38e   :  { %v536_v16 = vadd.f32 %v614_v55, %v531_v32  ;;  %v524_v0 = vmul.f32 %v502_v63, %v982_v5 }
 0x390   :  { %v540_v62 = vadd.f32 %v536_v16, %v826_v18  ;;  %v529_v17 = vmul.f32 %v613_v31, %v524_v0 }
 0x392   :  { %544 = vst [vmem:[#allocation10 + $0x18] sm:$0xff] %v540_v62  ;;  %v534_v1 = vadd.f32 %v614_v55, %v529_v17 }
 0x394   :  { %v538_v2 = vadd.f32 %v534_v1, %v828_v19 }
 0x396   :  { %542 = vst [vmem:[#allocation10 + $0x8] sm:$0xff] %v538_v2 }
 0x397   :  { %557 = dma.vmem_to_hbm [thread:$0]  %s550_s8, 512, %s552_s11, [#allocation4], %s768_s23, %s768_s23, %s769_s24  }
 0x398   :  { %765 = dma.done.wait [#allocation4], 512  }
 0x399   :  { %766 = vsyncadd [#allocation4], 4294966784 }
 0x39a   :  { %562 = vsyncpa [#allocation3], 1 }
 0x39b   :  { %563 = vsyncpa [#allocation6], 1 }
 0x39c   :  { %564 = vsyncpa [#allocation9], 1 }
 0x39d   :  { %565 = vsyncpa [#allocation4], 1 }

</bundles_post_ra>
